<compile_context>
chip_gen: v7x
topology: tpu7x:2x2x1
jax: 0.10.0
libtpu: 0.0.40
codegen_flags: <defaults>
</compile_context>

<pallas_src>
import functools

import jax
import jax.numpy as jnp
from jax.experimental import pallas as pl
from jax.experimental.pallas import tpu as pltpu

_LANES = 128


def _medusa_kl_kernel(logits_ref, labels_ref, out_ref, p_scr, plogp_scr, *,
                      shift_base, n_loss, seq):
    h = pl.program_id(1)
    shift = h + shift_base                       # dynamic per-head row shift

    # ---- labels statistics: computed once per batch element (h == 0), cached
    #      in VMEM scratch and reused by every head of that batch element.
    @pl.when(h == 0)
    def _():
        lb = labels_ref[0].astype(jnp.float32)                  # (seq, V)
        lb = lb - jnp.max(lb, axis=-1, keepdims=True)
        lb_exp = jnp.exp(lb)
        denom = jnp.sum(lb_exp, axis=-1, keepdims=True)         # (seq, 1)
        p = lb_exp * (1.0 / denom)          # exact reciprocal: (seq,1) divide is cheap
        logp = lb - jnp.log(denom)
        plogp_scr[...] = jnp.sum(p * logp, axis=-1, keepdims=True)   # (seq, 1)
        p_scr[...] = p
        if shift_base:                      # static: head 0 already needs shift==1
            p_scr[pl.ds(0, seq - 1), :] = p_scr[pl.ds(1, seq - 1), :]

    # ---- carry: advance the cached softmax(labels) by ONE row per head step.
    #      Afterwards p_scr[t] == p[t + shift] for t < seq - shift; rows beyond
    #      that hold stale values and are masked out of the reduction below.
    #      TODO(synk): swap the one-row self-copy for pltpu.roll(p_scr[...], -1,
    #      axis=0) (idle XLU slot) once its sublane direction is verified.
    if n_loss > 1:
        @pl.when(h > 0)
        def _():
            p_scr[pl.ds(0, seq - 1), :] = p_scr[pl.ds(1, seq - 1), :]

    # ---- per-head log-softmax(logits) + masked KL reduction (no shifted slices)
    lg = logits_ref[0, 0].astype(jnp.float32)                    # (seq, V)
    lg = lg - jnp.max(lg, axis=-1, keepdims=True)
    lq = lg - jnp.log(jnp.sum(jnp.exp(lg), axis=-1, keepdims=True))

    row = jax.lax.broadcasted_iota(jnp.int32, (seq, 1), 0)       # (seq, 1)
    cross_rows = jnp.sum(p_scr[...] * lq, axis=-1, keepdims=True)      # (seq, 1)
    cross = jnp.sum(jnp.where(row < seq - shift, cross_rows, 0.0))
    plogp_term = jnp.sum(jnp.where(row >= shift, plogp_scr[...], 0.0))
    kl_h = plogp_term - cross

    # one lane-dense row per (batch, head), written exactly once
    out_ref[:, pl.ds(h, 1), :] = jnp.full((1, 1, _LANES), kl_h, jnp.float32)


def _pad_vocab_to_lanes(x):
    """Pad the vocab axis to a multiple of 128 with a large-negative sentinel.

    exp(sentinel - max) underflows to exactly 0, so padded lanes contribute
    nothing to softmax denominators, p*logp, or p*logq."""
    rem = (-x.shape[-1]) % _LANES
    if rem == 0:
        return x
    pad = [(0, 0)] * (x.ndim - 1) + [(0, rem)]
    return jnp.pad(x, pad, constant_values=-1e9)


def _vmem_limit_bytes():
    # Per-generation cap with headroom: ~3/4 of physical VMEM, never above
    # 100 MiB (so 48 MiB on v7x's 64 MiB, 96 MiB on v5e/v6e's 128 MiB).
    try:
        cap = int(pltpu.get_tpu_info().vmem_capacity_bytes)
    except Exception:
        return 48 * 1024 * 1024        # conservative: safe on every generation
    return min(100 * 1024 * 1024, (cap * 3) // 4)


def medusa_kl_div_loss(logits, labels, lamda=0.01, loss_on_original=False):
    num_heads, batch, seq, vocab = logits.shape
    assert labels.shape == (batch, seq, vocab), (labels.shape, logits.shape)
    shift_base = 0 if loss_on_original else 1
    # PyTorch loop stops at the first head whose shifted seq length hits 0.
    n_loss = min(num_heads, seq - shift_base)
    assert n_loss > 0, "no valid loss terms for these shapes"

    # remainder-lane handling for vocab not a multiple of 128 (e.g. 51865)
    logits = _pad_vocab_to_lanes(logits)
    labels = _pad_vocab_to_lanes(labels)
    vp = logits.shape[-1]

    kernel = functools.partial(_medusa_kl_kernel, shift_base=shift_base,
                               n_loss=n_loss, seq=seq)

    bytes_in = (n_loss * batch * seq * vp * logits.dtype.itemsize
                + batch * seq * vp * labels.dtype.itemsize)
    cost = pl.CostEstimate(
        flops=int(batch * seq * vp * (8 + 6 * n_loss)),
        transcendentals=int(batch * seq * vp * (1 + n_loss)),
        bytes_accessed=int(bytes_in + batch * n_loss * _LANES * 4),
    )

    out = pl.pallas_call(
        kernel,
        out_shape=jax.ShapeDtypeStruct((batch, n_loss, _LANES), jnp.float32),
        grid=(batch, n_loss),
        in_specs=[
            # one head of one batch element per grid step (small, pipelined DMAs)
            pl.BlockSpec((1, 1, seq, vp), lambda b, h: (h, b, 0, 0)),
            # labels tile: block index constant across the head axis, so it is
            # DMA'd once per batch element and its softmax is cached in scratch.
            pl.BlockSpec((1, seq, vp), lambda b, h: (b, 0, 0)),
        ],
        # output block resident across the head axis; one lane-dense 128-wide
        # row per head, each written exactly once.
        out_specs=pl.BlockSpec((1, n_loss, _LANES), lambda b, h: (b, 0, 0)),
        scratch_shapes=[
            pltpu.VMEM((seq, vp), jnp.float32),   # cached softmax(labels), advanced per head
            pltpu.VMEM((seq, 1), jnp.float32),    # cached per-row sum(p * log p)
        ],
        compiler_params=pltpu.CompilerParams(
            # batch is embarrassingly parallel (v7x 2nd TensorCore); the head
            # axis carries the label-stat scratch, so it stays "arbitrary".
            dimension_semantics=("parallel", "arbitrary"),
            vmem_limit_bytes=_vmem_limit_bytes(),
        ),
        cost_estimate=cost,
    )(logits, labels)

    # tiny scalar glue: sum over batch + KLDivLoss 'batchmean' + lamda.
    return out[:, :, 0].sum(axis=0) * (lamda / batch)


def medusa_kl_div_loss_ref(logits, labels, lamda=0.01, loss_on_original=False):
    """Pure-JAX reference mirroring the PyTorch module."""
    p = jax.nn.softmax(labels, axis=-1)
    logp = jax.nn.log_softmax(labels, axis=-1)
    lq = jax.nn.log_softmax(logits, axis=-1)
    num_heads, batch, seq, _ = logits.shape
    losses = []
    if loss_on_original:
        losses.append(lamda * jnp.sum(p * (logp - lq[0])) / batch)
        start, shift_idx = 1, 0
    else:
        start, shift_idx = 0, 1
    for i in range(start, num_heads):
        length = seq - (shift_idx + i)
        if length <= 0:
            break
        q_i = lq[i, :, :length]
        p_i = p[:, shift_idx + i:]
        lp_i = logp[:, shift_idx + i:]
        losses.append(lamda * jnp.sum(p_i * (lp_i - q_i)) / batch)
    return jnp.stack(losses)


if __name__ == "__main__":
    num_heads, batch, seq, vocab = 4, 2, 16, 128
    k1, k2, k3, k4 = jax.random.split(jax.random.PRNGKey(0), 4)
    logits = jax.random.normal(k1, (num_heads, batch, seq, vocab), dtype=jnp.float32)
    labels = jax.random.normal(k2, (batch, seq, vocab), dtype=jnp.float32)

    # default (loss_on_original=False) path
    out = jax.block_until_ready(medusa_kl_div_loss(logits, labels))
    ref = jax.block_until_ready(medusa_kl_div_loss_ref(logits, labels))
    assert out.shape == ref.shape, (out.shape, ref.shape)
    assert jnp.allclose(out, ref, rtol=1e-4, atol=1e-6), (out, ref)

    # loss_on_original=True path
    out2 = jax.block_until_ready(medusa_kl_div_loss(logits, labels, loss_on_original=True))
    ref2 = jax.block_until_ready(medusa_kl_div_loss_ref(logits, labels, loss_on_original=True))
    assert out2.shape == ref2.shape, (out2.shape, ref2.shape)
    assert jnp.allclose(out2, ref2, rtol=1e-4, atol=1e-6), (out2, ref2)

    # bf16-on-the-wire path (recommended: halves HBM traffic; kernel upcasts),
    # now checked for accuracy against the same f32 math on upcast inputs.
    lg_bf, lb_bf = logits.astype(jnp.bfloat16), labels.astype(jnp.bfloat16)
    out3 = jax.block_until_ready(medusa_kl_div_loss(lg_bf, lb_bf))
    ref3 = jax.block_until_ready(
        medusa_kl_div_loss_ref(lg_bf.astype(jnp.float32), lb_bf.astype(jnp.float32)))
    assert jnp.allclose(out3, ref3, rtol=1e-4, atol=1e-6), (out3, ref3)

    # vocab not a multiple of 128 -> wrapper pads with -1e9 sentinel lanes
    logits2 = jax.random.normal(k3, (3, 2, 16, 200), dtype=jnp.float32)
    labels2 = jax.random.normal(k4, (2, 16, 200), dtype=jnp.float32)
    out4 = jax.block_until_ready(medusa_kl_div_loss(logits2, labels2))
    ref4 = jax.block_until_ready(medusa_kl_div_loss_ref(logits2, labels2))
    assert out4.shape == ref4.shape, (out4.shape, ref4.shape)
    assert jnp.allclose(out4, ref4, rtol=1e-4, atol=1e-6), (out4, ref4)

    print("KERNEL_OK")
</pallas_src>

<mosaic_0001>
module attributes {stable_mosaic.version = 11 : i64} {
  func.func @_medusa_kl_kernel(%arg0: i32, %arg1: i32, %arg2: memref<1x1x16x128xf32, #tpu.memory_space<vmem>>, %arg3: memref<1x16x128xf32, #tpu.memory_space<vmem>>, %arg4: memref<1x4x128xf32, #tpu.memory_space<vmem>>, %arg5: memref<16x128xf32, #tpu.memory_space<vmem>>, %arg6: memref<16x1xf32, #tpu.memory_space<vmem>>) attributes {dimension_semantics = [#tpu.dimension_semantics<parallel>, #tpu.dimension_semantics<arbitrary>], iteration_bounds = array<i64: 2, 4>, scalar_prefetch = 0 : i64, scratch_operands = 2 : i64, tpu.core_type = #tpu.core_type<tc>, window_params = [{transform_indices = @transform_0, window_bounds = array<i64: 1, 1, 16, 128>}, {transform_indices = @transform_1, window_bounds = array<i64: 1, 16, 128>}, {transform_indices = @transform_2, window_bounds = array<i64: 1, 4, 128>}]} {
    %c1_i32 = arith.constant 1 : i32
    %0 = arith.addi %arg1, %c1_i32 : i32
    %c0_i32 = arith.constant 0 : i32
    %1 = arith.cmpi eq, %arg1, %c0_i32 : i32
    %2 = arith.extui %1 : i1 to i32
    %c0_i32_0 = arith.constant 0 : i32
    %3 = arith.cmpi ne, %2, %c0_i32_0 : i32
    scf.if %3 {
      %c0_18 = arith.constant 0 : index
      %c0_19 = arith.constant 0 : index
      %c0_20 = arith.constant 0 : index
      %46 = vector.load %arg3[%c0_18, %c0_19, %c0_20] : memref<1x16x128xf32, #tpu.memory_space<vmem>>, vector<1x16x128xf32>
      %47 = vector.shape_cast %46 : vector<1x16x128xf32> to vector<16x128xf32>
      %cst_21 = arith.constant dense<0xFF800000> : vector<16xf32>
      %48 = vector.multi_reduction <maximumf>, %47, %cst_21 [1] : vector<16x128xf32> to vector<16xf32>
      %49 = vector.shape_cast %48 : vector<16xf32> to vector<16x1xf32>
      %50 = vector.broadcast %49 : vector<16x1xf32> to vector<16x128xf32>
      %51 = arith.subf %47, %50 : vector<16x128xf32>
      %52 = math.exp %51 : vector<16x128xf32>
      %cst_22 = arith.constant dense<0.000000e+00> : vector<16xf32>
      %53 = vector.multi_reduction <add>, %52, %cst_22 [1] : vector<16x128xf32> to vector<16xf32>
      %54 = vector.shape_cast %53 : vector<16xf32> to vector<16x1xf32>
      %cst_23 = arith.constant 1.000000e+00 : f32
      %55 = vector.broadcast %cst_23 : f32 to vector<16x1xf32>
      %56 = arith.divf %55, %54 : vector<16x1xf32>
      %57 = vector.broadcast %56 : vector<16x1xf32> to vector<16x128xf32>
      %58 = arith.mulf %52, %57 : vector<16x128xf32>
      %59 = math.log %54 : vector<16x1xf32>
      %60 = vector.broadcast %59 : vector<16x1xf32> to vector<16x128xf32>
      %61 = arith.subf %51, %60 : vector<16x128xf32>
      %62 = arith.mulf %58, %61 : vector<16x128xf32>
      %cst_24 = arith.constant dense<0.000000e+00> : vector<16xf32>
      %63 = vector.multi_reduction <add>, %62, %cst_24 [1] : vector<16x128xf32> to vector<16xf32>
      %64 = vector.shape_cast %63 : vector<16xf32> to vector<16x1xf32>
      %c0_25 = arith.constant 0 : index
      %c0_26 = arith.constant 0 : index
      %65 = vector.load %arg6[%c0_25, %c0_26] : memref<16x1xf32, #tpu.memory_space<vmem>>, vector<16x1xf32>
      tpu.vector_store %arg6[%c0_25, %c0_26], %64 {strides = array<i32>} : memref<16x1xf32, #tpu.memory_space<vmem>>, vector<16x1xf32>,
      %c0_27 = arith.constant 0 : index
      %c0_28 = arith.constant 0 : index
      %66 = vector.load %arg5[%c0_27, %c0_28] : memref<16x128xf32, #tpu.memory_space<vmem>>, vector<16x128xf32>
      tpu.vector_store %arg5[%c0_27, %c0_28], %58 {strides = array<i32>} : memref<16x128xf32, #tpu.memory_space<vmem>>, vector<16x128xf32>,
      %c1 = arith.constant 1 : index
      %c0_29 = arith.constant 0 : index
      %67 = vector.load %arg5[%c1, %c0_29] : memref<16x128xf32, #tpu.memory_space<vmem>>, vector<15x128xf32>
      %c0_30 = arith.constant 0 : index
      %c0_31 = arith.constant 0 : index
      %68 = vector.load %arg5[%c0_30, %c0_31] : memref<16x128xf32, #tpu.memory_space<vmem>>, vector<15x128xf32>
      tpu.vector_store %arg5[%c0_30, %c0_31], %67 {strides = array<i32>} : memref<16x128xf32, #tpu.memory_space<vmem>>, vector<15x128xf32>,
    } else {
    }
    %c0_i32_1 = arith.constant 0 : i32
    %4 = arith.cmpi sgt, %arg1, %c0_i32_1 : i32
    %5 = arith.extui %4 : i1 to i32
    %c0_i32_2 = arith.constant 0 : i32
    %6 = arith.cmpi ne, %5, %c0_i32_2 : i32
    scf.if %6 {
      %c1 = arith.constant 1 : index
      %c0_18 = arith.constant 0 : index
      %46 = vector.load %arg5[%c1, %c0_18] : memref<16x128xf32, #tpu.memory_space<vmem>>, vector<15x128xf32>
      %c0_19 = arith.constant 0 : index
      %c0_20 = arith.constant 0 : index
      %47 = vector.load %arg5[%c0_19, %c0_20] : memref<16x128xf32, #tpu.memory_space<vmem>>, vector<15x128xf32>
      tpu.vector_store %arg5[%c0_19, %c0_20], %46 {strides = array<i32>} : memref<16x128xf32, #tpu.memory_space<vmem>>, vector<15x128xf32>,
    } else {
    }
    %c0 = arith.constant 0 : index
    %c0_3 = arith.constant 0 : index
    %c0_4 = arith.constant 0 : index
    %c0_5 = arith.constant 0 : index
    %7 = vector.load %arg2[%c0, %c0_3, %c0_4, %c0_5] : memref<1x1x16x128xf32, #tpu.memory_space<vmem>>, vector<1x1x16x128xf32>
    %8 = vector.shape_cast %7 : vector<1x1x16x128xf32> to vector<16x128xf32>
    %cst = arith.constant dense<0xFF800000> : vector<16xf32>
    %9 = vector.multi_reduction <maximumf>, %8, %cst [1] : vector<16x128xf32> to vector<16xf32>
    %10 = vector.shape_cast %9 : vector<16xf32> to vector<16x1xf32>
    %11 = vector.broadcast %10 : vector<16x1xf32> to vector<16x128xf32>
    %12 = arith.subf %8, %11 : vector<16x128xf32>
    %13 = math.exp %12 : vector<16x128xf32>
    %cst_6 = arith.constant dense<0.000000e+00> : vector<16xf32>
    %14 = vector.multi_reduction <add>, %13, %cst_6 [1] : vector<16x128xf32> to vector<16xf32>
    %15 = vector.shape_cast %14 : vector<16xf32> to vector<16x1xf32>
    %16 = math.log %15 : vector<16x1xf32>
    %17 = vector.broadcast %16 : vector<16x1xf32> to vector<16x128xf32>
    %18 = arith.subf %12, %17 : vector<16x128xf32>
    %19 = tpu.iota {dimensions = array<i32: 0>} : vector<16x1xi32>
    %c0_7 = arith.constant 0 : index
    %c0_8 = arith.constant 0 : index
    %20 = vector.load %arg5[%c0_7, %c0_8] : memref<16x128xf32, #tpu.memory_space<vmem>>, vector<16x128xf32>
    %21 = arith.mulf %20, %18 : vector<16x128xf32>
    %cst_9 = arith.constant dense<0.000000e+00> : vector<16xf32>
    %22 = vector.multi_reduction <add>, %21, %cst_9 [1] : vector<16x128xf32> to vector<16xf32>
    %23 = vector.shape_cast %22 : vector<16xf32> to vector<16x1xf32>
    %c16_i32 = arith.constant 16 : i32
    %24 = arith.subi %c16_i32, %0 : i32
    %25 = vector.broadcast %24 : i32 to vector<16x1xi32>
    %26 = arith.cmpi slt, %19, %25 : vector<16x1xi32>
    %cst_10 = arith.constant 0.000000e+00 : f32
    %27 = vector.broadcast %cst_10 : f32 to vector<16x1xf32>
    %28 = arith.select %26, %23, %27 : vector<16x1xi1>, vector<16x1xf32>
    %29 = vector.shape_cast %28 : vector<16x1xf32> to vector<1x16x1xf32>
    %cst_11 = arith.constant dense<0.000000e+00> : vector<1xf32>
    %30 = vector.multi_reduction <add>, %29, %cst_11 [1, 2] : vector<1x16x1xf32> to vector<1xf32>
    %31 = vector.shape_cast %30 : vector<1xf32> to vector<1x1x1xf32>
    %32 = vector.extract %31[0, 0, 0] : f32 from vector<1x1x1xf32>
    %33 = vector.broadcast %0 : i32 to vector<16x1xi32>
    %34 = arith.cmpi sge, %19, %33 : vector<16x1xi32>
    %c0_12 = arith.constant 0 : index
    %c0_13 = arith.constant 0 : index
    %35 = vector.load %arg6[%c0_12, %c0_13] : memref<16x1xf32, #tpu.memory_space<vmem>>, vector<16x1xf32>
    %cst_14 = arith.constant 0.000000e+00 : f32
    %36 = vector.broadcast %cst_14 : f32 to vector<16x1xf32>
    %37 = arith.select %34, %35, %36 : vector<16x1xi1>, vector<16x1xf32>
    %38 = vector.shape_cast %37 : vector<16x1xf32> to vector<1x16x1xf32>
    %cst_15 = arith.constant dense<0.000000e+00> : vector<1xf32>
    %39 = vector.multi_reduction <add>, %38, %cst_15 [1, 2] : vector<1x16x1xf32> to vector<1xf32>
    %40 = vector.shape_cast %39 : vector<1xf32> to vector<1x1x1xf32>
    %41 = vector.extract %40[0, 0, 0] : f32 from vector<1x1x1xf32>
    %42 = arith.subf %41, %32 : f32
    %43 = vector.broadcast %42 : f32 to vector<1x1x128xf32>
    %c0_16 = arith.constant 0 : index
    %44 = arith.index_cast %arg1 : i32 to index
    %c0_17 = arith.constant 0 : index
    %45 = vector.load %arg4[%c0_16, %44, %c0_17] : memref<1x4x128xf32, #tpu.memory_space<vmem>>, vector<1x1x128xf32>
    tpu.vector_store %arg4[%c0_16, %44, %c0_17], %43 {strides = array<i32>} : memref<1x4x128xf32, #tpu.memory_space<vmem>>, vector<1x1x128xf32>,
    return
  }
  func.func @transform_0(%arg0: i32, %arg1: i32) -> (i32, i32, i32, i32) {
    %c0_i32 = arith.constant 0 : i32
    %c0_i32_0 = arith.constant 0 : i32
    %c0_i32_1 = arith.constant 0 : i32
    return %arg1, %arg0, %c0_i32, %c0_i32_0 : i32, i32, i32, i32
  }
  func.func @transform_1(%arg0: i32, %arg1: i32) -> (i32, i32, i32) {
    %c0_i32 = arith.constant 0 : i32
    %c0_i32_0 = arith.constant 0 : i32
    %c0_i32_1 = arith.constant 0 : i32
    return %arg0, %c0_i32, %c0_i32_0 : i32, i32, i32
  }
  func.func @transform_2(%arg0: i32, %arg1: i32) -> (i32, i32, i32) {
    %c0_i32 = arith.constant 0 : i32
    %c0_i32_0 = arith.constant 0 : i32
    %c0_i32_1 = arith.constant 0 : i32
    return %arg0, %c0_i32, %c0_i32_0 : i32, i32, i32
  }
}

</mosaic_0001>

<bundles_post_ra>
// kernel: tpu_custom_call.1
= control target key start
LH: loop header
LB: loop body
LE: loop exit
PB: predicated region body
PF: predicated region fallthrough
CT: control target
= control target key end

     0   :  { %s1172_s0 = inlined_call_operand.hbm [shape: f32[4,2,16,128], index: 0, kind: input, shape index: {}]   ;;  %s1173_s1 = inlined_call_operand.hbm [shape: f32[2,16,128], index: 1, kind: input, shape index: {}]   ;;  %s1174_s2 = inlined_call_operand.hbm [shape: f32[2,4,128], index: 2, kind: output, shape index: {}]  }
   0x1   :  { %1184 = sst [smem:[#allocation14_spill]] %s1172_s0 }
   0x2   :  { %7 = vsyncpa [#allocation5], 0 }
   0x3   :  { %9 = vsyncpa [#allocation5 + $0x1], 0 }
   0x4   :  { %10 = vsyncpa [#allocation8], 0 }
   0x5   :  { %12 = vsyncpa [#allocation8 + $0x1], 0 }
   0x6   :  { %13 = vsyncpa [#allocation6], 0 }
   0x7   :  { %15 = vsyncpa [#allocation6 + $0x1], 0  ;;  %s834_s9 = smov 0   ;;  %s836_s10 = smov 0  }
   0x8   :  { %s838_s11 = smov 0   ;;  %s840_s12 = smov 0  }
   0x9   :  { %s842_s13 = smov 0   ;;  %s844_s14 = smov 0  }
   0xa   :  { %s846_s15 = smov 0   ;;  %s848_s16 = smov 0  }
   0xb   :  { %s850_s17 = smov 0   ;;  %s852_s18 = smov 0  }
   0xc   :  { %s854_s19 = smov 0  }
   0xd LB: > { %s1175_s20 = sadd.s32 4294967295, %s812_s19   ;;  %s30_s21 = sadd.s32 1, %s804_s17  ;;  %s812_s19 = sphi %s854_s19, %s21_s19   ;;  %s808_s18 = sphi %s852_s18, %s1217_s18   ;;  %s804_s17 = sphi %s850_s17, %s1216_s17   ;;  %s800_s16 = sphi %s848_s16, %s1215_s16   ;;  %s796_s15 = sphi %s846_s15, %s1214_s15   ;;  %s792_s14 = sphi %s844_s14, %s1213_s14   ;;  %s788_s13 = sphi %s842_s13, %s1212_s13   ;;  %s784_s12 = sphi %s840_s12, %s1211_s12   ;;  %s780_s11 = sphi %s838_s11, %s1210_s11   ;;  %s776_s10 = sphi %s836_s10, %s1209_s10   ;;  %s772_s9 = sphi %s834_s9, %s1208_s9  }
   0xe   : > { %p31_p0 = scmp.ge.s32.totalorder %s30_s21, 4  ;;  %s33_s22 = sadd.s32 1, %s808_s18 }
   0xf   : > { %s42_s23 = sadd.s32 1, %s792_s14  ;;  %p49_p1 = scmp.ne.s32.totalorder %s792_s14, %s788_s13 }
  0x10   : > { %s1219_s21 = smov (%p31_p0, %s30_s21), 0  ;;  %s1221_s22 = smov (!%p31_p0, %s33_s22), %s808_s18 }
  0x11   : > { %s37_s24 = ssub.s32 %s804_s17, %s1219_s21  ;;  %p1178_p2 = scmp.eq.s32.totalorder %s812_s19, 0 }
  0x12   : > { %p35_p3 = scmp.ge.s32.totalorder %s1221_s22, 2  ;;  %p55_p4 = scmp.ne.s32.totalorder %s788_s13, %s784_s12 }
  0x13   : > { %p902_p5 = por %p1178_p2, %p49_p1  ;;  %p908_p6 = scmp.eq.s32.totalorder %s1175_s20, 0 }
  0x14   : > { %s1223_s22 = smov (%p35_p3, %s1221_s22), 0  ;;  %p1177_p8 = scmp.lt.s32.totalorder %s812_s19, 8 }
  0x15   : > { %1187 = sst [smem:[#allocation13_spill]] %s1223_s22  ;;  %p916_p7 = por %p908_p6, %p55_p4 }
  0x16   : > { %s922_s28 = ssub.s32 %s808_s18, %s1223_s22  ;;  %s131_s30 = sand.u32 1, %s792_s14  }
  0x17   : > { %s1188_s27 = scalar_select %p916_p7, 1, 0 }
  0x18   : > { %s39_s29 = sor.u32 %s922_s28, %s37_s24  ;;  %s475_s3 = sshll.u32 %s131_s30, 4 }
  0x19   : > { %p40_p10 = scmp.eq.s32.totalorder %s39_s29, 0  ;;  %s476_s5 = sshll.u32 %s808_s18, 1 }
  0x1a   : > { %s477_s6 = sshll.u32 %s804_s17, 2  ;;  %s135_s7 = scalar_lea.vmem [#allocation4], %s475_s3 }
  0x1b   : > { %s929_s4 = scalar_select %p40_p10, %s792_s14, %s42_s23  }
  0x1c   : > { %s144_s8 = sshll.u32 %s135_s7, 4  ;;  %s141_s12 = sadd.s32 %s477_s6, %s476_s5  ;;  %s933_s8 = int_to_ptr.vmem [resolvable:$true] %s144_s8 }
  0x1d   : > { %s478_s20 = sshll.u32 %s141_s12, 7  ;;  %p939_p11 = pnand %p1177_p8, %p902_p5 }
  0x1e   : > { %s1190_s0 = sld [smem:[#allocation14_spill]]  ;;  %s948_s3 = scalar_lea.sflag [#allocation5], %s131_s30 }
  0x1f   : > { %p628_p13 = pneg %p939_p11 }
  0x24   : > { %s946_s23 = scalar_lea.hbm %s1190_s0, %s478_s20  ;;  %s631_s7 = scalar_lea.hbm %s1190_s0, 2048 }
  0x25   : > { %s626_s5 = scalar_lea.hbm %s946_s23, 256  ;;  %p632_p3 = scmp.lt.u32.totalorder %s946_s23, %s1190_s0 }
  0x26   : > { %p627_p12 = scmp.ne.s32.totalorder %s946_s23, %s626_s5  ;;  %p633_p4 = scmp.lt.u32.totalorder %s631_s7, %s626_s5 }
  0x27   : > { %p635_p10 = scmp.lt.u32.totalorder %s626_s5, %s946_s23 }
  0x28   : > { %p629_p0 = pnand %p628_p13, %p627_p12  ;;  %p634_p5 = por %p633_p4, %p632_p3 }
  0x2a   : > { %p630_p1 = pneg %p629_p0  ;;  %p636_p8 = por %p635_p10, %p634_p5 }
  0x2c   : > { %p637_p2 = pnand %p636_p8, %p630_p1 }
  0x2e   : > { %640 = shalt.err (!%p637_p2)
}
  0x2f   : > { %s641_s30 = scalar_lea.vmem %s933_s8, 256  ;;  %s814_s24 = smov [#allocation4]  }
  0x30   : > { %p642_p12 = scmp.ne.s32.totalorder %s933_s8, %s641_s30  ;;  %s646_s29 = sshll.u32 %s814_s24, 4  ;;  %s647_s29 = int_to_ptr.vmem [resolvable:$false] %s646_s29 }
  0x31   : > { %s648_s25 = scalar_lea.vmem %s647_s29, 512  ;;  %p649_p7 = scmp.lt.s32.totalorder %s933_s8, %s647_s29 }
  0x32   : > { %p644_p0 = pnand %p642_p12, %p628_p13  ;;  %p650_p3 = scmp.lt.s32.totalorder %s648_s25, %s641_s30 }
  0x34   : > { %p645_p9 = pneg %p644_p0  ;;  %p651_p4 = por %p650_p3, %p649_p7 }
  0x36   : > { %p652_p5 = pnand %p651_p4, %p645_p9 }
  0x38   : > { %655 = shalt.err (!%p652_p5)
}
  0x39   : > { %s1180_s5 = smov 128   ;;  %s1181_s6 = smov 8  }
  0x3a   : > { %506 = dma.hbm_to_vmem [thread:$0]  (!%p939_p11), %s946_s23, 256, %s933_s8, %s948_s3, %s1180_s5, %s1180_s5, %s1181_s6  }
  0x3b   : > { %p482_p2 = scmp.ge.s32.totalorder %s812_s19, 1  ;;  %p173_p7 = scmp.lt.s32.totalorder %s812_s19, 9 }
  0x3c   : > { %s472_s20 = sadd.s32 4294967294, %s812_s19   ;;  %s68_s12 = sadd.s32 1, %s780_s11 }
  0x3d   : > { %p981_p8 = pnand %p482_p2, %p173_p7  ;;  %p75_p9 = scmp.ne.s32.totalorder %s780_s11, %s776_s10 }
  0x3e   : > { %p1192_p13 = scmp.eq.s32.totalorder %s922_s28, 0  ;;  %p1193_p1 = scmp.eq.s32.totalorder %s812_s19, 0 }
  0x3f   : > { %p81_p11 = scmp.ne.s32.totalorder %s776_s10, %s772_s9  ;;  %s1195_s8 = sadd.s32 4294967295, %s812_s19  }
  0x40   : > { %s992_s30 = scalar_select %p1192_p13, %s780_s11, %s68_s12  }
  0x41   : > { %p996_p10 = por %p75_p9, %p1193_p1  ;;  %p105_p12 = scmp.eq.s32.totalorder %s1195_s8, 7 }
  0x42   : > { %p111_p0 = scmp.eq.s32.totalorder %s472_s20, 7  ;;  %p1006_p3 = por %p81_p11, %p908_p6 }
  0x43   : > { %s154_s3 = sand.u32 1, %s780_s11   ;;  %p1011_p4 = por %p105_p12, %p75_p9 }
  0x44   : > { %s1196_s23 = scalar_select %p1006_p3, 1, 0 }
  0x45   : > { %s1197_s28 = scalar_select %p1011_p4, 1, 0 }
  0x46   : > { %p1015_p5 = por %p111_p0, %p81_p11  ;;  %s479_s29 = sshll.u32 %s154_s3, 4 }
  0x47   : > { %s492_s25 = sshll.u32 %s808_s18, 8  ;;  %s158_s26 = scalar_lea.vmem [#allocation7], %s479_s29 }
  0x48   : > { %s1198_s24 = scalar_select %p1015_p5, 1, 0 }
  0x49   : > { %s1023_s20 = scalar_lea.hbm %s1173_s1, %s492_s25  ;;  %s165_s8 = sshll.u32 %s158_s26, 4  ;;  %s1025_s8 = int_to_ptr.vmem [resolvable:$true] %s165_s8 }
  0x4a   : > { %p1199_p6 = scmp.lt.s32.totalorder %s812_s19, 8  ;;  %s1035_s0 = scalar_lea.sflag [#allocation8], %s154_s3 }
  0x4b   : > { %s656_s5 = scalar_lea.hbm %s1023_s20, 256  ;;  %s661_s22 = scalar_lea.hbm %s1173_s1, 512 }
  0x4c   : > { %p1031_p2 = pnand %p1199_p6, %p996_p10  ;;  %p657_p7 = scmp.ne.s32.totalorder %s1023_s20, %s656_s5 }
  0x4d   : > { %p662_p10 = scmp.lt.u32.totalorder %s1023_s20, %s1173_s1  ;;  %p663_p11 = scmp.lt.u32.totalorder %s661_s22, %s656_s5 }
  0x4e   : > { %p658_p9 = pneg %p1031_p2  ;;  %p665_p0 = scmp.lt.u32.totalorder %s656_s5, %s1023_s20 }
  0x4f   : > { %p664_p12 = por %p663_p11, %p662_p10 }
  0x50   : > { %p659_p13 = pnand %p658_p9, %p657_p7 }
  0x51   : > { %p666_p6 = por %p665_p0, %p664_p12 }
  0x52   : > { %p660_p1 = pneg %p659_p13 }
  0x54   : > { %p667_p5 = pnand %p666_p6, %p660_p1 }
  0x56   : > { %670 = shalt.err (!%p667_p5)
}
  0x57   : > { %s671_s3 = scalar_lea.vmem %s1025_s8, 256  ;;  %s817_s29 = smov [#allocation7]  }
  0x58   : > { %p672_p7 = scmp.ne.s32.totalorder %s1025_s8, %s671_s3  ;;  %s676_s25 = sshll.u32 %s817_s29, 4  ;;  %s677_s25 = int_to_ptr.vmem [resolvable:$false] %s676_s25 }
  0x59   : > { %s678_s12 = scalar_lea.vmem %s677_s25, 512  ;;  %p679_p3 = scmp.lt.s32.totalorder %s1025_s8, %s677_s25 }
  0x5a   : > { %p674_p13 = pnand %p672_p7, %p658_p9  ;;  %p680_p10 = scmp.lt.s32.totalorder %s678_s12, %s671_s3 }
  0x5c   : > { %p675_p4 = pneg %p674_p13  ;;  %p681_p11 = por %p680_p10, %p679_p3 }
  0x5e   : > { %p682_p12 = pnand %p681_p11, %p675_p4 }
  0x60   : > { %685 = shalt.err (!%p682_p12)
}
  0x61   : > { %s1201_s5 = smov 8   ;;  %s1202_s22 = smov 128  }
  0x62   : > { %509 = dma.hbm_to_vmem [thread:$0]  (!%p1031_p2), %s1023_s20, 256, %s1025_s8, %s1035_s0, %s1202_s22, %s1202_s22, %s1201_s5  }
  0x63   : > { %177 = sbr.rel (%p981_p8) target bundleno = 1276 (0x4fc), region = 28  ;;  %s179_s26 = sand.u32 (!%p981_p8), 1, %s788_s13  }
  0x64   : > { %s1069_s29 = sshll.u32 (!%p981_p8), %s179_s26, 4  ;;  %s180_s3 = scalar_lea.sflag (!%p981_p8), [#allocation5], %s179_s26 }
  0x65   : > { %s183_s25 = scalar_lea.vmem (!%p981_p8), [#allocation4], %s1069_s29  ;;  %p1203_p3 = scmp.ne.s32.totalorder (!%p981_p8), %s1188_s27, 0 }
  0x6a   : > { %759 = dma.done.wait (%p1203_p3), %s180_s3, 256  }
  0x6b   : > { %761 = vsyncadd (%p1203_p3), %s180_s3, 4294967040  ;;  %s1077_s6 = sand.u32 1, %s776_s10   ;;  %p1204_p8 = scmp.ne.s32.totalorder %s1196_s23, 0 }
  0x6c   : > { %s484_s0 = sshll.u32 %s1077_s6, 4  ;;  %s189_s7 = scalar_lea.sflag [#allocation8], %s1077_s6 }
  0x6d   : > { %s192_s20 = scalar_lea.vmem [#allocation7], %s484_s0 }
  0x6e   : > { %763 = dma.done.wait (%p1204_p8), %s189_s7, 256  }
  0x6f   : > { %765 = vsyncadd (%p1204_p8), %s189_s7, 4294967040  ;;  %s485_s8 = sshll.u32 %s1077_s6, 2  ;;  %s218_s12 = sadd.s32 1, %s796_s15 }
  0x70   : > { %s1087_s27 = scalar_lea.vmem [#allocation9], %s485_s8  ;;  %p486_p4 = scmp.ne.s32.totalorder %s796_s15, 0 }
  0x71   : > { %v223_v0 = vld [vmem:[%s192_s20] sm:$0xff] (!%p486_p4)  ;;  %v224_v1 = vld [vmem:[%s192_s20 + $0x8] sm:$0xff] (!%p486_p4)  ;;  %vm257_vm0 = vcmask (!%p486_p4), 7168  }
  0x72   : > { %222 = sbr.rel (%p486_p4) target bundleno = 578 (0x242), region = 40  ;;  %225 = vmax.xlane.f32.xlu0 (!%p486_p4), %v223_v0 }
  0x76   : > { %227 = vmax.xlane.f32.xlu0 (!%p486_p4), %v224_v1 }
  0xff   : > { %v226_v2 = vpop.xlane.xlu0 %225 }
 0x100   : > { %v229_v3 = vsub.f32 %v223_v0, %v226_v2 }
 0x102   : > { %v231_v4 = vmul.f32 1.442695, %v229_v3 }
 0x103   : > { %v228_v5 = vpop.xlane.xlu0 %227 }
 0x104   : > { %606 = vpow2.f32 %v231_v4  ;;  %v230_v6 = vsub.f32 %v224_v1, %v228_v5 }
 0x106   : > { %v233_v7 = vmul.f32 1.442695, %v230_v6 }
 0x108   : > { %608 = vpow2.f32 %v233_v7 }
 0x10e   : > { %v607_v8 = vpop.eup %606 }
 0x10f   : > { %235 = vadd.xlane.f32.xlu1 %v607_v8 }
 0x112   : > { %v609_v9 = vpop.eup %608 }
 0x113   : > { %237 = vadd.xlane.f32.xlu1 %v609_v9 }
 0x19c   : > { %v236_v10 = vpop.xlane.xlu1 %235 }
 0x19d   : > { %610 = vrcp.f32 %v236_v10 }
 0x19e   : > { %612 = vlog2.f32 %v236_v10 }
 0x1a0   : > { %v238_v11 = vpop.xlane.xlu1 %237 }
 0x1a1   : > { %614 = vrcp.f32 %v238_v11 }
 0x1a2   : > { %616 = vlog2.f32 %v238_v11 }
 0x1a7   : > { %v611_v12 = vpop.eup %610 }
 0x1a8   : > { %v613_v13 = vpop.eup %612  ;;  %v243_v14 = vmul.f32 %v611_v12, %v607_v8 }
 0x1a9   : > { %v246_v15 = vmul.f32 0.6931472, %v613_v13 }
 0x1aa   : > { %260 = vst [vmem:[#allocation2] sm:$0xff] %v243_v14 }
 0x1ab   : > { %v615_v16 = vpop.eup %614  ;;  %v249_v17 = vsub.f32 %v229_v3, %v246_v15 }
 0x1ac   : > { %v617_v18 = vpop.eup %616  ;;  %v244_v19 = vmul.f32 %v615_v16, %v609_v9 }
 0x1ad   : > { %v248_v20 = vmul.f32 0.6931472, %v617_v18  ;;  %v251_v21 = vmul.f32 %v249_v17, %v243_v14 }
 0x1ae   : > { %261 = vst [vmem:[#allocation2 + $0x8] sm:$0xff] %v244_v19 }
 0x1af   : > { %253 = vadd.xlane.f32.xlu0 %v251_v21  ;;  %v250_v22 = vsub.f32 %v230_v6, %v248_v20 }
 0x1b1   : > { %v252_v23 = vmul.f32 %v250_v22, %v244_v19 }
 0x1b3   : > { %255 = vadd.xlane.f32.xlu1 %v252_v23 }
 0x1b5   : > { %v262_v24 = vld [vmem:[#allocation2 + $0x1] sm:$0xff]  ;;  %v263_v25 = vld [vmem:[#allocation2 + $0x9] sm:$0x7f] }
 0x1b6   : > { %264 = vst [vmem:[#allocation2] sm:$0xff] %v262_v24  ;;  %265 = vst [vmem:[#allocation2 + $0x8] sm:$0x7f] %v263_v25 }
 0x23c   : > { %v254_v26 = vpop.xlane.xlu0 %253 }
 0x23d   : > { %258 = vst.msk [vmem:[#allocation3] sm:$0xff] %vm257_vm0, %v254_v26 }
 0x240   : > { %v256_v27 = vpop.xlane.xlu1 %255 }
 0x241   : > { %259 = vst.msk [vmem:[#allocation3 + $0x8] sm:$0xff] %vm257_vm0, %v256_v27 }
 0x242 PF: > { %p487_p5 = scmp.le.s32.totalorder %s796_s15, 0 }
 0x243   : > { %v270_v28 = vld [vmem:[#allocation2 + $0x1] sm:$0xff] (!%p487_p5)  ;;  %v271_v29 = vld [vmem:[#allocation2 + $0x9] sm:$0x7f] (!%p487_p5) }
 0x244   : > { %269 = sbr.rel (%p487_p5) target bundleno = 587 (0x24b), region = 44  ;;  %272 = vst [vmem:[#allocation2] sm:$0xff] (!%p487_p5), %v270_v28  ;;  %273 = vst [vmem:[#allocation2 + $0x8] sm:$0x7f] (!%p487_p5), %v271_v29 }
 0x24b PF: > { %v274_v30 = vld [vmem:[%s183_s25] sm:$0xff]  ;;  %v275_v31 = vld [vmem:[%s183_s25 + $0x8] sm:$0xff]  ;;  %v296_v51 = vlaneseq  ;;  %vm313_vm1 = vcmask 7168   ;;  %v326_v55 = vstv %s218_s12  ;;  %s307_s23 = ssub.s32 15, %s796_s15  ;;  %s489_s5 = sshll.u32 %s800_s16, 6 }
 0x24c   : > { %276 = vmax.xlane.f32.xlu0 %v274_v30  ;;  %v299_v44 = vld [vmem:[#allocation2] sm:$0xff]  ;;  %v300_v49 = vld [vmem:[#allocation2 + $0x8] sm:$0xff]  ;;  %v329_v56 = vld [vmem:[#allocation3] sm:$0xff]  ;;  %v308_v63 = vstv %s307_s23  ;;  %s363_s26 = sshll.u32 %s1087_s27, 4  ;;  %s347_s3 = scalar_lea.vmem %s1087_s27, %s796_s15 [#allocation9]  ;;  %s1111_s26 = int_to_ptr.vmem [resolvable:$true] %s363_s26 }
 0x24d   : > { %v297_v53 = vshrl.u32 %v296_v51, 7  ;;  %v330_v57 = vld [vmem:[#allocation3 + $0x8] sm:$0xff]  ;;  %s1109_s20 = scalar_lea.hbm %s1174_s2, %s489_s5  ;;  %s350_s8 = scalar_lea.sflag [#allocation6], %s1077_s6 }
 0x24e   : > { %s686_s12 = scalar_lea.vmem %s1111_s26, 64  ;;  %p1205_p9 = scmp.ne.s32.totalorder %s1197_s28, 0 }
 0x24f   : > { %v298_v54 = vadd.s32 8, %v297_v53  ;;  %vm327_vm2 = vcmp.ge.s32.totalorder %v297_v53, %v326_v55  ;;  %vm309_vm4 = vcmp.lt.s32.totalorder %v297_v53, %v308_v63  ;;  %p687_p2 = scmp.ne.s32.totalorder %s1111_s26, %s686_s12  ;;  %s818_s15 = smov [#allocation9]  }
 0x250   : > { %278 = vmax.xlane.f32.xlu0 %v275_v31  ;;  %v331_v58 = vsel %vm327_vm2, %v329_v56, 0.0  ;;  %s690_s16 = sshll.u32 %s818_s15, 4  ;;  %s691_s16 = int_to_ptr.vmem [resolvable:$false] %s690_s16 }
 0x251   : > { %vm328_vm3 = vcmp.ge.s32.totalorder %v298_v54, %v326_v55  ;;  %v333_v60 = vsel %vm313_vm1, %v331_v58, 0.0  ;;  %vm310_vm5 = vcmp.lt.s32.totalorder %v298_v54, %v308_v63  ;;  %p688_p1 = pnand %p687_p2, %p1205_p9  ;;  %s692_s27 = scalar_lea.vmem %s691_s16, 128 }
 0x252   : > { %v332_v59 = vsel %vm328_vm3, %v330_v57, 0.0  ;;  %p693_p6 = scmp.lt.s32.totalorder %s1111_s26, %s691_s16  ;;  %p694_p7 = scmp.lt.s32.totalorder %s692_s27, %s686_s12 }
 0x253   : > { %v334_v61 = vsel %vm313_vm1, %v332_v59, 0.0  ;;  %p689_p0 = pneg %p688_p1 }
 0x254   : > { %v335_v62 = vadd.f32 %v334_v61, %v333_v60  ;;  %p695_p13 = por %p694_p7, %p693_p6 }
 0x256   : > { %p696_p10 = pnand %p695_p13, %p689_p0 }
 0x2d9   : > { %v277_v32 = vpop.xlane.xlu0 %276 }
 0x2da   : > { %v280_v33 = vsub.f32 %v274_v30, %v277_v32 }
 0x2dc   : > { %v282_v34 = vmul.f32 1.442695, %v280_v33 }
 0x2dd   : > { %v279_v35 = vpop.xlane.xlu0 %278 }
 0x2de   : > { %v281_v36 = vsub.f32 %v275_v31, %v279_v35  ;;  %618 = vpow2.f32 %v282_v34 }
 0x2e0   : > { %v284_v37 = vmul.f32 1.442695, %v281_v36 }
 0x2e2   : > { %620 = vpow2.f32 %v284_v37 }
 0x2e8   : > { %v619_v38 = vpop.eup %618 }
 0x2e9   : > { %286 = vadd.xlane.f32.xlu1 %v619_v38 }
 0x2ec   : > { %v621_v39 = vpop.eup %620 }
 0x2ed   : > { %288 = vadd.xlane.f32.xlu1 %v621_v39 }
 0x376   : > { %v287_v40 = vpop.xlane.xlu1 %286 }
 0x377   : > { %622 = vlog2.f32 %v287_v40 }
 0x37a   : > { %v289_v41 = vpop.xlane.xlu1 %288 }
 0x37b   : > { %624 = vlog2.f32 %v289_v41 }
 0x381   : > { %v623_v42 = vpop.eup %622 }
 0x382   : > { %v291_v43 = vmul.f32 0.6931472, %v623_v42 }
 0x384   : > { %v294_v45 = vsub.f32 %v280_v33, %v291_v43 }
 0x385   : > { %v625_v46 = vpop.eup %624 }
 0x386   : > { %v293_v47 = vmul.f32 0.6931472, %v625_v46  ;;  %v301_v48 = vmul.f32 %v299_v44, %v294_v45 }
 0x388   : > { %303 = vadd.xlane.f32.xlu0 %v301_v48  ;;  %v295_v50 = vsub.f32 %v281_v36, %v293_v47 }
 0x38a   : > { %v302_v52 = vmul.f32 %v300_v49, %v295_v50 }
 0x38c   : > { %305 = vadd.xlane.f32.xlu1 %v302_v52 }
 0x390   : > { %336 = vadd.xlane.f32.xlu1 %v335_v62 }
 0x415   : > { %v304_v0 = vpop.xlane.xlu0 %303 }
 0x416   : > { %v311_v1 = vsel %vm309_vm4, %v304_v0, 0.0 }
 0x417   : > { %v314_v4 = vsel %vm313_vm1, %v311_v1, 0.0 }
 0x419   : > { %v306_v2 = vpop.xlane.xlu1 %305 }
 0x41a   : > { %v312_v3 = vsel %vm310_vm5, %v306_v2, 0.0 }
 0x41b   : > { %v315_v5 = vsel %vm313_vm1, %v312_v3, 0.0 }
 0x41c   : > { %v316_v6 = vadd.f32 %v315_v5, %v314_v4 }
 0x41d   : > { %v337_v7 = vpop.xlane.xlu1 %336 }
 0x41e   : > { %317 = vadd.xlane.f32.xlu0 %v316_v6  ;;  %v338_v8 = vrot.slane %v337_v7, 4 }
 0x420   : > { %v339_v9 = vadd.f32 %v338_v8, %v337_v7 }
 0x422   : > { %v340_v10 = vrot.slane %v339_v9, 2 }
 0x424   : > { %v341_v14 = vadd.f32 %v340_v10, %v339_v9 }
 0x426   : > { %v342_v17 = vrot.slane %v341_v14, 1 }
 0x428   : > { %v343_v20 = vadd.f32 %v342_v17, %v341_v14 }
 0x4ab   : > { %v318_v11 = vpop.xlane.xlu0 %317 }
 0x4ac   : > { %v319_v12 = vrot.slane %v318_v11, 4 }
 0x4ae   : > { %v320_v13 = vadd.f32 %v319_v12, %v318_v11 }
 0x4b0   : > { %v321_v15 = vrot.slane %v320_v13, 2 }
 0x4b2   : > { %v322_v16 = vadd.f32 %v321_v15, %v320_v13 }
 0x4b4   : > { %v323_v18 = vrot.slane %v322_v16, 1 }
 0x4b6   : > { %v324_v19 = vadd.f32 %v323_v18, %v322_v16 }
 0x4b8   : > { %493 = vpush %v324_v19 }
 0x4b9   : > { %495 = vpush %v343_v20 }
 0x4e9   : > { %s494_s22 = spop %493 }
 0x4ea   : > { %s496_s29 = spop %495 }
 0x4eb   : > { %s345_s25 = ssub.f32 %s496_s29, %s494_s22 }
 0x4ed   : > { %v346_v21 = vstv %s345_s25 }
 0x4ee   : > { %348 = vst [vmem:[%s347_s3] sm:$0x1] %v346_v21 }
 0x4ef   : > { %699 = shalt.err (!%p696_p10)
}
 0x4f0   : > { %s700_s6 = scalar_lea.hbm %s1109_s20, 64  ;;  %s704_s22 = scalar_lea.hbm %s1174_s2, 128 }
 0x4f1   : > { %p701_p11 = scmp.ne.s32.totalorder %s1109_s20, %s700_s6  ;;  %p705_p8 = scmp.lt.u32.totalorder %s1109_s20, %s1174_s2 }
 0x4f2   : > { %p706_p4 = scmp.lt.u32.totalorder %s704_s22, %s700_s6  ;;  %p708_p2 = scmp.lt.u32.totalorder %s700_s6, %s1109_s20 }
 0x4f3   : > { %p702_p12 = pnand %p701_p11, %p1205_p9 }
 0x4f4   : > { %p707_p5 = por %p706_p4, %p705_p8 }
 0x4f5   : > { %p703_p3 = pneg %p702_p12 }
 0x4f6   : > { %p709_p1 = por %p708_p2, %p707_p5 }
 0x4f8   : > { %p710_p0 = pnand %p709_p1, %p703_p3 }
 0x4fa   : > { %713 = shalt.err (!%p710_p0)
}
 0x4fb   : > { %501 = dma.vmem_to_hbm [thread:$0]  (%p1205_p9), %s1111_s26, 64, %s1109_s20, %s350_s8  }
 0x4fc PF: > { %p515_p6 = scmp.ge.s32.totalorder %s812_s19, 2  ;;  %s375_s25 = sand.u32 1, %s772_s9  }
 0x4fd   : > { %p1206_p7 = scmp.ne.s32.totalorder %s1198_s24, 0  ;;  %s376_s0 = scalar_lea.sflag [#allocation6], %s375_s25 }
 0x4ff   : > { %p511_p13 = pnand %p515_p6, %p1206_p7 }
 0x501   : > { %767 = dma.done.wait (!%p511_p13), %s376_s0, 64  }
 0x502   : > { %769 = vsyncadd (!%p511_p13), %s376_s0, 4294967232  ;;  %s21_s19 = sadd.s32 1, %s812_s19   ;;  %s1207_s28 = sld [smem:[#allocation13_spill]] }
 0x503   : > { %p18_p10 = scmp.ge.s32.totalorder %s21_s19, 10   ;;  %s1208_s9 = smov %s776_s10 }
 0x504   : > { %s1209_s10 = smov %s780_s11  ;;  %s1210_s11 = smov %s992_s30 }
 0x505   : > { %s1211_s12 = smov %s788_s13  ;;  %s1212_s13 = smov %s792_s14 }
 0x506   : > { %s1213_s14 = smov %s929_s4  ;;  %s1214_s15 = smov %s804_s17 }
 0x507   : > { %s1215_s16 = smov %s808_s18  ;;  %s1216_s17 = smov %s1219_s21 }
 0x508   : > { %s1217_s18 = smov %s1207_s28  ;;  %20 = sbr.rel (!%p18_p10) target bundleno = 13 (0xd), region = 95 }
 0x50f   :  { %381 = vsyncpa [#allocation5], 1 }
 0x510   :  { %383 = vsyncpa [#allocation5 + $0x1], 1 }
 0x511   :  { %384 = vsyncpa [#allocation8], 1 }
 0x512   :  { %386 = vsyncpa [#allocation8 + $0x1], 1 }
 0x513   :  { %387 = vsyncpa [#allocation6], 1 }
 0x514   :  { %389 = vsyncpa [#allocation6 + $0x1], 1 }

</bundles_post_ra>
